<compile_context>
chip_gen: v5e
topology: v5e:2x2
jax: 0.10.0
libtpu: 0.0.40
codegen_flags: <defaults>
</compile_context>

<pallas_src>
import functools

import jax
import jax.numpy as jnp
from jax import lax
from jax.experimental import pallas as pl
from jax.experimental.pallas import tpu as pltpu


# A @ B^T : contract last dim of lhs with last dim of rhs.
_NT = (((1,), (1,)), ((), ()))


# --------------------------------------------------------------------------
# Exact (erf-based) GELU, as in torch.nn.GELU() default.
# erf via Abramowitz & Stegun 7.1.26 (|err| <= 1.5e-7) — exp/mul/add/where
# lower cleanly on VPU/EUP.  In bf16 mode the divide goes to the EUP via
# pl.reciprocal(approx=True).
# TODO(synk): swap _erf for lax.erf once a Mosaic lowering for erf is guaranteed.
# --------------------------------------------------------------------------
def _erf(x, *, approx_recip):
    a1 = 0.254829592
    a2 = -0.284496736
    a3 = 1.421413741
    a4 = -1.453152027
    a5 = 1.061405429
    p = 0.3275911
    ax = jnp.abs(x)
    denom = 1.0 + p * ax
    if approx_recip:
        t = pl.reciprocal(denom, approx=True)   # EUP slot (free under the MXU)
    else:
        t = 1.0 / denom                          # exact, matches nn.GELU to <1e-6
    poly = ((((a5 * t + a4) * t + a3) * t + a2) * t + a1) * t
    y = 1.0 - poly * jnp.exp(-ax * ax)
    return jnp.where(x < 0, -y, y)


def _gelu_exact(x, *, approx_recip):
    return 0.5 * x * (1.0 + _erf(x * 0.7071067811865476, approx_recip=approx_recip))


# --------------------------------------------------------------------------
# Pallas kernel.
# grid = (num_row_tiles, num_ff_tiles); ff axis is last ("arbitrary"), the
# output block stays resident across it (accumulator pattern).
#   x_ref   : (TM, E)
#   wi0_ref : (TF, E)   nn.Linear layout (out, in) — NT matmul
#   wi1_ref : (TF, E)
#   wo_ref  : (E, TF)   nn.Linear layout — NT matmul
#   out_ref : (TM, E)
#   acc_ref : (TM, E) f32 VMEM scratch
# --------------------------------------------------------------------------
def _gated_ffn_kernel(x_ref, wi0_ref, wi1_ref, wo_ref, out_ref, acc_ref,
                      *, approx_recip):
    f = pl.program_id(1)

    @pl.when(f == 0)
    def _init():
        acc_ref[...] = jnp.zeros_like(acc_ref)

    x = x_ref[...]                                                 # (TM, E)
    # Weights used in native layout: no wrapper-side transpose/repack of HBM.
    h0 = lax.dot_general(x, wi0_ref[...], _NT,
                         preferred_element_type=jnp.float32)      # (TM, TF)
    h1 = lax.dot_general(x, wi1_ref[...], _NT,
                         preferred_element_type=jnp.float32)      # (TM, TF)
    g = _gelu_exact(h0, approx_recip=approx_recip) * h1           # (TM, TF) f32

    # Fold this ff tile straight into the output projection (no concat,
    # no (M, F) hidden ever materialized).
    acc_ref[...] += lax.dot_general(g.astype(wo_ref.dtype), wo_ref[...], _NT,
                                    preferred_element_type=jnp.float32)

    @pl.when(f == pl.num_programs(1) - 1)
    def _finalize():
        out_ref[...] = acc_ref[...].astype(out_ref.dtype)


# --------------------------------------------------------------------------
# Tile selection (generation-aware) + wrapper.
# --------------------------------------------------------------------------
def _round_up(a, b):
    return ((a + b - 1) // b) * b


def _detect_tpu():
    gen = None
    vmem_cap = None
    try:
        info = pltpu.get_tpu_info()
        vmem_cap = getattr(info, "vmem_capacity_bytes", None)
    except Exception:
        pass
    try:
        kind = jax.devices()[0].device_kind.lower()
        for g in (7, 6, 5, 4):
            if (f"v{g}" in kind) or (f"tpu{g}" in kind):
                gen = g
                break
    except Exception:
        pass
    return gen, vmem_cap


def _tile_budget(gen, vmem_cap):
    mib = 1 << 20
    if gen is not None and gen >= 7:
        # v7x: 64 MiB VMEM / TC, 2 TCs -> smaller tiles, >=2 row tiles.
        tm_cap, tf_cap, budget, min_rows = 512, 256, 48 * mib, 2
    elif gen == 6:
        # v6e: 918 TF/s vs ~1.4 TB/s -> big row tiles to be compute-bound.
        tm_cap, tf_cap, budget, min_rows = 1024, 512, 100 * mib, 1
    elif gen == 5:
        # v5e: roofline knee near tm~256-512 with bf16; 128 MiB physical VMEM.
        tm_cap, tf_cap, budget, min_rows = 512, 512, 100 * mib, 1
    else:
        tm_cap, tf_cap, budget, min_rows = 512, 256, 48 * mib, 1
    if vmem_cap:
        budget = min(budget, max(vmem_cap - 16 * mib, 16 * mib))
    return tm_cap, tf_cap, budget, min_rows


def _vmem_footprint(tm, tf, E, in_bytes, out_bytes):
    # double-buffered input blocks + double-buffered output block + f32 acc
    return (2 * (tm * E + 2 * tf * E + E * tf) * in_bytes
            + 2 * tm * E * out_bytes
            + tm * E * 4)


def _select_tiles(M, E, F, in_bytes, out_bytes):
    tm_cap, tf_cap, budget, min_rows = _tile_budget(*_detect_tpu())

    # tf: multiple of 128 (it is the lane dim of the wo block); prefer the
    # largest divisor of F <= tf_cap so the last ff tile is not zero padding.
    tf_cap = max(128, (tf_cap // 128) * 128)
    tf = None
    t = tf_cap
    while t >= 128:
        if F % t == 0:
            tf = t
            break
        t -= 128
    if tf is None:
        tf = min(tf_cap, _round_up(F, 128))

    # tm: multiple of 16 for bf16 sublane packing.
    tm = min(_round_up(M, 16), tm_cap)

    # Shrink to fit the VMEM budget (weight tiles first, then rows).
    while _vmem_footprint(tm, tf, E, in_bytes, out_bytes) > budget:
        if tf > 128:
            tf = max(128, ((tf // 2) // 128) * 128)
        elif tm > 16:
            tm = max(16, _round_up(tm // 2, 16))
        else:
            break

    # v7x: ensure >= 2 row tiles so the "parallel" axis shards across both
    # TensorCores (the ff reduction axis cannot be split).
    M_pad = _round_up(M, tm)
    while min_rows > 1 and (M_pad // tm) < min_rows and tm > 8:
        tm = max(8, _round_up(tm // 2, 8))
        M_pad = _round_up(M, tm)

    return tm, tf, int(budget)


def dense_gated_ffn(x, wi_0, wi_1, wo, *, tm=None, tf=None,
                    matmul_dtype=jnp.bfloat16):
    """T5 gated FFN:  wo(GELU(wi_0(x)) * wi_1(x)).

    x    : (B, S, E)
    wi_0 : (F, E)   nn.Linear weight layout (out_features, in_features) — used as-is.
    wi_1 : (F, E)
    wo   : (E, F)   nn.Linear layout — used as-is.
    matmul_dtype : dtype of the MXU operands (default bf16; accumulation and
                   the GELU gate stay f32).  Pass jnp.float32 for exact mode.
                   Store the weights in this dtype to avoid any per-call cast.
    """
    B, S, E = x.shape
    F = wi_0.shape[0]
    out_dtype = x.dtype
    M = B * S

    if matmul_dtype is None:
        matmul_dtype = x.dtype
    in_bytes = jnp.dtype(matmul_dtype).itemsize
    out_bytes = jnp.dtype(out_dtype).itemsize

    auto_tm, auto_tf, vmem_budget = _select_tiles(M, E, F, in_bytes, out_bytes)
    if tm is None:
        tm = auto_tm
    if tf is None:
        tf = auto_tf

    M_pad = _round_up(M, tm)
    F_pad = _round_up(F, tf)
    nf = F_pad // tf

    # Fold batch*seq rows into one matmul M dimension.
    x2 = x.reshape(M, E).astype(matmul_dtype)
    if M_pad != M:
        x2 = jnp.pad(x2, ((0, M_pad - M), (0, 0)))

    # Weights stay in native layout; zero ff-padding is exact
    # (GELU(0)*0 contributes 0, padded wo columns contribute 0).
    wi0 = wi_0.astype(matmul_dtype)
    wi1 = wi_1.astype(matmul_dtype)
    wo_ = wo.astype(matmul_dtype)
    if F_pad != F:
        wi0 = jnp.pad(wi0, ((0, F_pad - F), (0, 0)))
        wi1 = jnp.pad(wi1, ((0, F_pad - F), (0, 0)))
        wo_ = jnp.pad(wo_, ((0, 0), (0, F_pad - F)))

    approx_recip = jnp.dtype(matmul_dtype) != jnp.dtype(jnp.float32)
    kernel = functools.partial(_gated_ffn_kernel, approx_recip=approx_recip)

    out = pl.pallas_call(
        kernel,
        out_shape=jax.ShapeDtypeStruct((M_pad, E), out_dtype),
        grid_spec=pltpu.PrefetchScalarGridSpec(
            num_scalar_prefetch=0,
            grid=(M_pad // tm, nf),
            in_specs=[
                pl.BlockSpec((tm, E), lambda m, f: (m, 0)),    # x rows (resident over f)
                pl.BlockSpec((tf, E), lambda m, f: (f, 0)),    # wi_0 ff tile
                pl.BlockSpec((tf, E), lambda m, f: (f, 0)),    # wi_1 ff tile
                pl.BlockSpec((E, tf), lambda m, f: (0, f)),    # wo ff tile
            ],
            out_specs=pl.BlockSpec((tm, E), lambda m, f: (m, 0)),
            scratch_shapes=[pltpu.VMEM((tm, E), jnp.float32)],
        ),
        compiler_params=pltpu.CompilerParams(
            dimension_semantics=("parallel", "arbitrary"),
            vmem_limit_bytes=int(vmem_budget)),
    )(x2, wi0, wi1, wo_)

    return out[:M].reshape(B, S, E)


# --------------------------------------------------------------------------
# Pure-JAX reference (exact, erf-based GELU like nn.GELU()).
# --------------------------------------------------------------------------
def reference_forward(x, wi_0, wi_1, wo):
    h0 = x @ wi_0.T
    h1 = x @ wi_1.T
    g = jax.nn.gelu(h0, approximate=False) * h1
    return g @ wo.T


if __name__ == "__main__":
    # Small shapes consistent with the module (ff_size = 4 * embed_size).
    B, S, E, FF = 2, 8, 32, 128

    key = jax.random.PRNGKey(0)
    kx, k0, k1, ko = jax.random.split(key, 4)

    x = jax.random.normal(kx, (B, S, E), jnp.float32)
    # nn.Linear weights are (out_features, in_features)
    wi_0 = jax.random.normal(k0, (FF, E), jnp.float32) * 0.1
    wi_1 = jax.random.normal(k1, (FF, E), jnp.float32) * 0.1
    wo = jax.random.normal(ko, (E, FF), jnp.float32) * 0.1

    ref = reference_forward(x, wi_0, wi_1, wo)

    # Exact mode (f32 MXU operands, exact erf divide): tight tolerance.
    out_f32 = jax.block_until_ready(
        dense_gated_ffn(x, wi_0, wi_1, wo, matmul_dtype=jnp.float32))
    assert out_f32.shape == (B, S, E)
    assert jnp.allclose(out_f32, ref, atol=1e-4, rtol=1e-4), (
        float(jnp.max(jnp.abs(out_f32 - ref))))

    # Default mode (bf16 MXU operands, f32 accumulation): loose tolerance.
    out_bf16 = jax.block_until_ready(dense_gated_ffn(x, wi_0, wi_1, wo))
    assert out_bf16.shape == (B, S, E)
    assert jnp.allclose(out_bf16, ref, atol=5e-2, rtol=5e-2), (
        float(jnp.max(jnp.abs(out_bf16 - ref))))

    print("KERNEL_OK")
</pallas_src>

<mosaic_0001>
module attributes {stable_mosaic.version = 11 : i64} {
  func.func @_gated_ffn_kernel(%arg0: i32, %arg1: i32, %arg2: memref<16x32xf32, #tpu.memory_space<vmem>>, %arg3: memref<128x32xf32, #tpu.memory_space<vmem>>, %arg4: memref<128x32xf32, #tpu.memory_space<vmem>>, %arg5: memref<32x128xf32, #tpu.memory_space<vmem>>, %arg6: memref<16x32xf32, #tpu.memory_space<vmem>>, %arg7: memref<16x32xf32, #tpu.memory_space<vmem>>) attributes {dimension_semantics = [#tpu.dimension_semantics<parallel>, #tpu.dimension_semantics<arbitrary>], iteration_bounds = array<i64: 1, 1>, scalar_prefetch = 0 : i64, scratch_operands = 1 : i64, tpu.core_type = #tpu.core_type<tc>, window_params = [{transform_indices = @transform_0, window_bounds = array<i64: 16, 32>}, {transform_indices = @transform_1, window_bounds = array<i64: 128, 32>}, {transform_indices = @transform_2, window_bounds = array<i64: 128, 32>}, {transform_indices = @transform_3, window_bounds = array<i64: 32, 128>}, {transform_indices = @transform_4, window_bounds = array<i64: 16, 32>}]} {
    %c0_i32 = arith.constant 0 : i32
    %0 = arith.cmpi eq, %arg1, %c0_i32 : i32
    %1 = arith.extui %0 : i1 to i32
    %c0_i32_0 = arith.constant 0 : i32
    %2 = arith.cmpi ne, %1, %c0_i32_0 : i32
    scf.if %2 {
      %cst_31 = arith.constant 0.000000e+00 : f32
      %57 = vector.broadcast %cst_31 : f32 to vector<16x32xf32>
      %c0_32 = arith.constant 0 : index
      %c0_33 = arith.constant 0 : index
      %58 = vector.load %arg7[%c0_32, %c0_33] : memref<16x32xf32, #tpu.memory_space<vmem>>, vector<16x32xf32>
      tpu.vector_store %arg7[%c0_32, %c0_33], %57 {strides = array<i32>} : memref<16x32xf32, #tpu.memory_space<vmem>>, vector<16x32xf32>,
    } else {
    }
    %c0 = arith.constant 0 : index
    %c0_1 = arith.constant 0 : index
    %3 = vector.load %arg2[%c0, %c0_1] : memref<16x32xf32, #tpu.memory_space<vmem>>, vector<16x32xf32>
    %c0_2 = arith.constant 0 : index
    %c0_3 = arith.constant 0 : index
    %4 = vector.load %arg3[%c0_2, %c0_3] : memref<128x32xf32, #tpu.memory_space<vmem>>, vector<128x32xf32>
    %cst = arith.constant dense<0.000000e+00> : vector<16x128xf32>
    %5 = tpu.matmul %3, %4, %cst {dimension_numbers = #tpu.dot_dimension_numbers<[1], [1], [0], [0], [0, 0, 1, 0], [], []>} : vector<16x32xf32>, vector<128x32xf32>, vector<16x128xf32> -> vector<16x128xf32>
    %c0_4 = arith.constant 0 : index
    %c0_5 = arith.constant 0 : index
    %6 = vector.load %arg4[%c0_4, %c0_5] : memref<128x32xf32, #tpu.memory_space<vmem>>, vector<128x32xf32>
    %cst_6 = arith.constant dense<0.000000e+00> : vector<16x128xf32>
    %7 = tpu.matmul %3, %6, %cst_6 {dimension_numbers = #tpu.dot_dimension_numbers<[1], [1], [0], [0], [0, 0, 1, 0], [], []>} : vector<16x32xf32>, vector<128x32xf32>, vector<16x128xf32> -> vector<16x128xf32>
    %cst_7 = arith.constant 5.000000e-01 : f32
    %8 = vector.broadcast %cst_7 : f32 to vector<16x128xf32>
    %9 = arith.mulf %8, %5 : vector<16x128xf32>
    %cst_8 = arith.constant 0.707106769 : f32
    %10 = vector.broadcast %cst_8 : f32 to vector<16x128xf32>
    %11 = arith.mulf %5, %10 : vector<16x128xf32>
    %12 = math.absf %11 : vector<16x128xf32>
    %cst_9 = arith.constant 0.327591091 : f32
    %13 = vector.broadcast %cst_9 : f32 to vector<16x128xf32>
    %14 = arith.mulf %13, %12 : vector<16x128xf32>
    %cst_10 = arith.constant 1.000000e+00 : f32
    %15 = vector.broadcast %cst_10 : f32 to vector<16x128xf32>
    %16 = arith.addf %15, %14 : vector<16x128xf32>
    %cst_11 = arith.constant 1.000000e+00 : f32
    %17 = vector.broadcast %cst_11 : f32 to vector<16x128xf32>
    %18 = arith.divf %17, %16 : vector<16x128xf32>
    %cst_12 = arith.constant 1.06140542 : f32
    %19 = vector.broadcast %cst_12 : f32 to vector<16x128xf32>
    %20 = arith.mulf %19, %18 : vector<16x128xf32>
    %cst_13 = arith.constant -1.45315206 : f32
    %21 = vector.broadcast %cst_13 : f32 to vector<16x128xf32>
    %22 = arith.addf %20, %21 : vector<16x128xf32>
    %23 = arith.mulf %22, %18 : vector<16x128xf32>
    %cst_14 = arith.constant 1.42141378 : f32
    %24 = vector.broadcast %cst_14 : f32 to vector<16x128xf32>
    %25 = arith.addf %23, %24 : vector<16x128xf32>
    %26 = arith.mulf %25, %18 : vector<16x128xf32>
    %cst_15 = arith.constant -0.284496725 : f32
    %27 = vector.broadcast %cst_15 : f32 to vector<16x128xf32>
    %28 = arith.addf %26, %27 : vector<16x128xf32>
    %29 = arith.mulf %28, %18 : vector<16x128xf32>
    %cst_16 = arith.constant 0.254829586 : f32
    %30 = vector.broadcast %cst_16 : f32 to vector<16x128xf32>
    %31 = arith.addf %29, %30 : vector<16x128xf32>
    %32 = arith.mulf %31, %18 : vector<16x128xf32>
    %cst_17 = arith.constant 0.000000e+00 : f32
    %33 = vector.broadcast %cst_17 : f32 to vector<16x128xf32>
    %34 = arith.subf %33, %12 : vector<16x128xf32>
    %35 = arith.mulf %34, %12 : vector<16x128xf32>
    %36 = math.exp %35 : vector<16x128xf32>
    %37 = arith.mulf %32, %36 : vector<16x128xf32>
    %cst_18 = arith.constant 1.000000e+00 : f32
    %38 = vector.broadcast %cst_18 : f32 to vector<16x128xf32>
    %39 = arith.subf %38, %37 : vector<16x128xf32>
    %cst_19 = arith.constant 0.000000e+00 : f32
    %40 = vector.broadcast %cst_19 : f32 to vector<16x128xf32>
    %41 = arith.cmpf olt, %11, %40 : vector<16x128xf32>
    %cst_20 = arith.constant 0.000000e+00 : f32
    %42 = vector.broadcast %cst_20 : f32 to vector<16x128xf32>
    %43 = arith.subf %42, %39 : vector<16x128xf32>
    %44 = arith.select %41, %43, %39 : vector<16x128xi1>, vector<16x128xf32>
    %cst_21 = arith.constant 1.000000e+00 : f32
    %45 = vector.broadcast %cst_21 : f32 to vector<16x128xf32>
    %46 = arith.addf %45, %44 : vector<16x128xf32>
    %47 = arith.mulf %9, %46 : vector<16x128xf32>
    %48 = arith.mulf %47, %7 : vector<16x128xf32>
    %c0_22 = arith.constant 0 : index
    %c0_23 = arith.constant 0 : index
    %49 = vector.load %arg7[%c0_22, %c0_23] : memref<16x32xf32, #tpu.memory_space<vmem>>, vector<16x32xf32>
    %c0_24 = arith.constant 0 : index
    %c0_25 = arith.constant 0 : index
    %50 = vector.load %arg5[%c0_24, %c0_25] : memref<32x128xf32, #tpu.memory_space<vmem>>, vector<32x128xf32>
    %cst_26 = arith.constant dense<0.000000e+00> : vector<16x32xf32>
    %51 = tpu.matmul %48, %50, %cst_26 {dimension_numbers = #tpu.dot_dimension_numbers<[1], [1], [0], [0], [0, 0, 1, 0], [], []>} : vector<16x128xf32>, vector<32x128xf32>, vector<16x32xf32> -> vector<16x32xf32>
    %52 = arith.addf %49, %51 : vector<16x32xf32>
    %c0_27 = arith.constant 0 : index
    %c0_28 = arith.constant 0 : index
    %53 = vector.load %arg7[%c0_27, %c0_28] : memref<16x32xf32, #tpu.memory_space<vmem>>, vector<16x32xf32>
    tpu.vector_store %arg7[%c0_27, %c0_28], %52 {strides = array<i32>} : memref<16x32xf32, #tpu.memory_space<vmem>>, vector<16x32xf32>,
    %c0_i32_29 = arith.constant 0 : i32
    %54 = arith.cmpi eq, %arg1, %c0_i32_29 : i32
    %55 = arith.extui %54 : i1 to i32
    %c0_i32_30 = arith.constant 0 : i32
    %56 = arith.cmpi ne, %55, %c0_i32_30 : i32
    scf.if %56 {
      %c0_31 = arith.constant 0 : index
      %c0_32 = arith.constant 0 : index
      %57 = vector.load %arg7[%c0_31, %c0_32] : memref<16x32xf32, #tpu.memory_space<vmem>>, vector<16x32xf32>
      %c0_33 = arith.constant 0 : index
      %c0_34 = arith.constant 0 : index
      %58 = vector.load %arg6[%c0_33, %c0_34] : memref<16x32xf32, #tpu.memory_space<vmem>>, vector<16x32xf32>
      tpu.vector_store %arg6[%c0_33, %c0_34], %57 {strides = array<i32>} : memref<16x32xf32, #tpu.memory_space<vmem>>, vector<16x32xf32>,
    } else {
    }
    return
  }
  func.func @transform_0(%arg0: i32, %arg1: i32) -> (i32, i32) {
    %c0_i32 = arith.constant 0 : i32
    %c0_i32_0 = arith.constant 0 : i32
    return %arg0, %c0_i32 : i32, i32
  }
  func.func @transform_1(%arg0: i32, %arg1: i32) -> (i32, i32) {
    %c0_i32 = arith.constant 0 : i32
    %c0_i32_0 = arith.constant 0 : i32
    return %arg1, %c0_i32 : i32, i32
  }
  func.func @transform_2(%arg0: i32, %arg1: i32) -> (i32, i32) {
    %c0_i32 = arith.constant 0 : i32
    %c0_i32_0 = arith.constant 0 : i32
    return %arg1, %c0_i32 : i32, i32
  }
  func.func @transform_3(%arg0: i32, %arg1: i32) -> (i32, i32) {
    %c0_i32 = arith.constant 0 : i32
    %c0_i32_0 = arith.constant 0 : i32
    return %c0_i32, %arg1 : i32, i32
  }
  func.func @transform_4(%arg0: i32, %arg1: i32) -> (i32, i32) {
    %c0_i32 = arith.constant 0 : i32
    %c0_i32_0 = arith.constant 0 : i32
    return %arg0, %c0_i32 : i32, i32
  }
}

</mosaic_0001>

<bundles_post_ra>
// kernel: tpu_custom_call.1
= control target key start
LH: loop header
LB: loop body
LE: loop exit
PB: predicated region body
PF: predicated region fallthrough
CT: control target
= control target key end

     0   :  { %vm22_vm0 = vcmask 261120   ;;  %s658_s0 = inlined_call_operand.vmem [shape: f32[16,32], index: 0, kind: input, shape index: {}]   ;;  %s659_s1 = inlined_call_operand.vmem [shape: f32[128,32], index: 1, kind: input, shape index: {}]   ;;  %s660_s2 = inlined_call_operand.vmem [shape: f32[128,32], index: 2, kind: input, shape index: {}]   ;;  %s661_s3 = inlined_call_operand.vmem [shape: f32[32,128], index: 3, kind: input, shape index: {}]   ;;  %s662_s4 = inlined_call_operand.hbm [shape: f32[16,32], index: 4, kind: output, shape index: {}]  }
   0x1   :  { %v42_v0 = vld [vmem:[%s659_s1 + $0x78] sm:$0xff]  ;;  %v41_v1 = vld [vmem:[%s659_s1 + $0x70] sm:$0xff] }
   0x2   :  { %348 = vmatpush.xpose.msk.msra.mxu0 %vm22_vm0, %v42_v0  ;;  %384 = vmatpush.xpose.msk.msra.mxu3 %vm22_vm0, %v42_v0 }
   0x3   :  { %9 = vsyncpa [#allocation4], 0  ;;  %v40_v2 = vld [vmem:[%s659_s1 + $0x68] sm:$0xff]  ;;  %v39_v3 = vld [vmem:[%s659_s1 + $0x60] sm:$0xff]  ;;  %s336_s13 = sshll.u32 %s662_s4, 4  ;;  %s440_s14 = smov 128   ;;  %s337_s13 = int_to_ptr.hbm [resolvable:$true] %s336_s13 }
   0x4   :  { %v38_v4 = vld [vmem:[%s659_s1 + $0x58] sm:$0xff]  ;;  %v37_v5 = vld [vmem:[%s659_s1 + $0x50] sm:$0xff]  ;;  %v36_v7 = vld [vmem:[%s659_s1 + $0x48] sm:$0xff]  ;;  %s441_s15 = smov 8  }
   0x5   :  { %v136_v6 = vld [vmem:[%s660_s2 + $0x78] sm:$0xff]  ;;  %v135_v8 = vld [vmem:[%s660_s2 + $0x70] sm:$0xff]  ;;  %v35_v9 = vld [vmem:[%s659_s1 + $0x40] sm:$0xff] }
   0x6   :  { %349 = vmatpush.xpose.msk.msra.mxu0 %vm22_vm0, %v41_v1  ;;  %385 = vmatpush.xpose.msk.msra.mxu3 %vm22_vm0, %v41_v1  ;;  %v134_v10 = vld [vmem:[%s660_s2 + $0x68] sm:$0xff]  ;;  %v34_v11 = vld [vmem:[%s659_s1 + $0x38] sm:$0xff]  ;;  %v133_v12 = vld [vmem:[%s660_s2 + $0x60] sm:$0xff] }
   0x7   :  { %366 = vmatpush.xpose.msk.msra.mxu1 %vm22_vm0, %v136_v6  ;;  %v33_v13 = vld [vmem:[%s659_s1 + $0x30] sm:$0xff]  ;;  %v132_v14 = vld [vmem:[%s660_s2 + $0x58] sm:$0xff]  ;;  %v32_v15 = vld [vmem:[%s659_s1 + $0x28] sm:$0xff] }
   0x8   :  { %v131_v16 = vld [vmem:[%s660_s2 + $0x50] sm:$0xff]  ;;  %v31_v17 = vld [vmem:[%s659_s1 + $0x20] sm:$0xff]  ;;  %v130_v18 = vld [vmem:[%s660_s2 + $0x48] sm:$0xff] }
   0x9   :  { %v30_v19 = vld [vmem:[%s659_s1 + $0x18] sm:$0xff]  ;;  %v129_v20 = vld [vmem:[%s660_s2 + $0x40] sm:$0xff]  ;;  %v29_v21 = vld [vmem:[%s659_s1 + $0x10] sm:$0xff] }
   0xa   :  { %350 = vmatpush.xpose.msk.msra.mxu0 %vm22_vm0, %v40_v2  ;;  %386 = vmatpush.xpose.msk.msra.mxu3 %vm22_vm0, %v40_v2  ;;  %v128_v22 = vld [vmem:[%s660_s2 + $0x38] sm:$0xff]  ;;  %v28_v23 = vld [vmem:[%s659_s1 + $0x8] sm:$0xff]  ;;  %v127_v24 = vld [vmem:[%s660_s2 + $0x30] sm:$0xff] }
   0xb   :  { %367 = vmatpush.xpose.msk.msra.mxu1 %vm22_vm0, %v135_v8  ;;  %v27_v25 = vld [vmem:[%s659_s1] sm:$0xff]  ;;  %v126_v26 = vld [vmem:[%s660_s2 + $0x28] sm:$0xff]  ;;  %v124_v30 = vld [vmem:[%s660_s2 + $0x18] sm:$0xff] }
   0xc   :  { %v25_v27 = vld [vmem:[%s658_s0] sm:$0xff]  ;;  %v26_v28 = vld [vmem:[%s658_s0 + $0x8] sm:$0xff]  ;;  %v123_v31 = vld [vmem:[%s660_s2 + $0x10] sm:$0xff] }
   0xd   :  { %v125_v29 = vld [vmem:[%s660_s2 + $0x20] sm:$0xff]  ;;  %v122_v32 = vld [vmem:[%s660_s2 + $0x8] sm:$0xff]  ;;  %v295_v34 = vld [vmem:[%s661_s3 + $0x18] sm:$0xff] }
   0xe   :  { %351 = vmatpush.xpose.msk.msra.mxu0 %vm22_vm0, %v39_v3  ;;  %387 = vmatpush.xpose.msk.msra.mxu3 %vm22_vm0, %v39_v3  ;;  %v121_v33 = vld [vmem:[%s660_s2] sm:$0xff]  ;;  %v294_v35 = vld [vmem:[%s661_s3 + $0x10] sm:$0xff]  ;;  %v293_v39 = vld [vmem:[%s661_s3 + $0x8] sm:$0xff] }
   0xf   :  { %368 = vmatpush.xpose.msk.msra.mxu1 %vm22_vm0, %v134_v10  ;;  %308 = vmatpush.xpose.msra.mxu2 %v295_v34  ;;  %v292_v57 = vld [vmem:[%s661_s3] sm:$0xff]  ;;  %s439_s3 = smov [#allocation3]  }
  0x10   :  { %s334_s10 = sshll.u32 %s439_s3, 4  ;;  %s335_s10 = int_to_ptr.vmem [resolvable:$true] %s334_s10 }
  0x12   :  { %352 = vmatpush.xpose.msk.msra.mxu0 %vm22_vm0, %v38_v4  ;;  %388 = vmatpush.xpose.msk.msra.mxu3 %vm22_vm0, %v38_v4 }
  0x13   :  { %369 = vmatpush.xpose.msk.msra.mxu1 %vm22_vm0, %v133_v12  ;;  %309 = vmatpush.xpose.msra.mxu2 %v294_v35 }
  0x16   :  { %353 = vmatpush.xpose.msk.msra.mxu0 %vm22_vm0, %v37_v5  ;;  %389 = vmatpush.xpose.msk.msra.mxu3 %vm22_vm0, %v37_v5 }
  0x17   :  { %370 = vmatpush.xpose.msk.msra.mxu1 %vm22_vm0, %v132_v14  ;;  %310 = vmatpush.xpose.msra.mxu2 %v293_v39  ;;  %v438_v14 = vmov 0.0  }
  0x18   :  { %23 = vst.msk [vmem:[#allocation2] sm:$0xff] %vm22_vm0, %v438_v14 }
  0x19   :  { %24 = vst.msk [vmem:[#allocation2 + $0x8] sm:$0xff] %vm22_vm0, %v438_v14 }
  0x1a   :  { %354 = vmatpush.xpose.msk.msra.mxu0 %vm22_vm0, %v36_v7  ;;  %390 = vmatpush.xpose.msk.msra.mxu3 %vm22_vm0, %v36_v7 }
  0x1b   :  { %371 = vmatpush.xpose.msk.msra.mxu1 %vm22_vm0, %v131_v16  ;;  %311 = vmatpush.xpose.msra.mxu2 %v292_v57 }
  0x1e   :  { %355 = vmatpush.xpose.msk.msra.mxu0 %vm22_vm0, %v35_v9  ;;  %391 = vmatpush.xpose.msk.msra.mxu3 %vm22_vm0, %v35_v9 }
  0x1f   :  { %372 = vmatpush.xpose.msk.msra.mxu1 %vm22_vm0, %v130_v18 }
  0x22   :  { %356 = vmatpush.xpose.msk.msra.mxu0 %vm22_vm0, %v34_v11  ;;  %392 = vmatpush.xpose.msk.msra.mxu3 %vm22_vm0, %v34_v11 }
  0x23   :  { %373 = vmatpush.xpose.msk.msra.mxu1 %vm22_vm0, %v129_v20 }
  0x26   :  { %357 = vmatpush.xpose.msk.msra.mxu0 %vm22_vm0, %v33_v13  ;;  %393 = vmatpush.xpose.msk.msra.mxu3 %vm22_vm0, %v33_v13 }
  0x27   :  { %374 = vmatpush.xpose.msk.msra.mxu1 %vm22_vm0, %v128_v22 }
  0x2a   :  { %358 = vmatpush.xpose.msk.msra.mxu0 %vm22_vm0, %v32_v15  ;;  %394 = vmatpush.xpose.msk.msra.mxu3 %vm22_vm0, %v32_v15 }
  0x2b   :  { %375 = vmatpush.xpose.msk.msra.mxu1 %vm22_vm0, %v127_v24 }
  0x2e   :  { %359 = vmatpush.xpose.msk.msra.mxu0 %vm22_vm0, %v31_v17  ;;  %395 = vmatpush.xpose.msk.msra.mxu3 %vm22_vm0, %v31_v17 }
  0x2f   :  { %376 = vmatpush.xpose.msk.msra.mxu1 %vm22_vm0, %v126_v26 }
  0x32   :  { %360 = vmatpush.xpose.msk.msra.mxu0 %vm22_vm0, %v30_v19  ;;  %396 = vmatpush.xpose.msk.msra.mxu3 %vm22_vm0, %v30_v19 }
  0x33   :  { %377 = vmatpush.xpose.msk.msra.mxu1 %vm22_vm0, %v125_v29 }
  0x36   :  { %361 = vmatpush.xpose.msk.msra.mxu0 %vm22_vm0, %v29_v21  ;;  %397 = vmatpush.xpose.msk.msra.mxu3 %vm22_vm0, %v29_v21 }
  0x37   :  { %378 = vmatpush.xpose.msk.msra.mxu1 %vm22_vm0, %v124_v30 }
  0x3a   :  { %362 = vmatpush.xpose.msk.msra.mxu0 %vm22_vm0, %v28_v23  ;;  %398 = vmatpush.xpose.msk.msra.mxu3 %vm22_vm0, %v28_v23 }
  0x3b   :  { %379 = vmatpush.xpose.msk.msra.mxu1 %vm22_vm0, %v123_v31 }
  0x3e   :  { %363 = vmatpush.xpose.msk.msra.mxu0 %vm22_vm0, %v27_v25  ;;  %399 = vmatpush.xpose.msk.msra.mxu3 %vm22_vm0, %v27_v25 }
  0x3f   :  { %380 = vmatpush.xpose.msk.msra.mxu1 %vm22_vm0, %v122_v32 }
  0x41   :  { %364 = vmatmul.msk.f32.vlgmr.msra.gmra.mxu0 %vm22_vm0, %v25_v27  ;;  %365 = vmatmul.msk.f32.vlgmr.msra.gmra.mxu3 %vm22_vm0, %v26_v28 }
  0x43   :  { %381 = vmatpush.xpose.msk.msra.mxu1 %vm22_vm0, %v121_v33 }
  0x46   :  { %382 = vmatmul.msk.f32.vlgmr.msra.gmra.mxu1 %vm22_vm0, %v25_v27 }
  0x4e   :  { %383 = vmatmul.msk.f32.gmra.mxu1 %vm22_vm0, %v26_v28 }
  0xbe   :  { %v627_v36 = vpop.f32.mrf.mxu0 }
  0xbf   :  { %v630_v37 = vmul.f32 0.70710677, %v627_v36 }
  0xc1   :  { %v212_v38 = vand.u32 2147483647, %v630_v37  ;;  %vm278_vm9 = vcmp.lt.f32.partialorder %v630_v37, 0.0 }
  0xc3   :  { %v214_v40 = vmul.f32 0.3275911, %v212_v38  ;;  %v266_v59 = vsub.f32 0.0, %v212_v38  ;;  %v202_v34 = vpop.f32.mrf.mxu1 }
  0xc4   :  { %v636_v41 = vpop.f32.mrf.mxu3 }
  0xc5   :  { %v216_v42 = vadd.f32 1.0, %v214_v40  ;;  %v639_v43 = vmul.f32 0.70710677, %v636_v41  ;;  %v268_v3 = vmul.f32 %v266_v59, %v212_v38  ;;  %v208_v38 = vmul.f32 0.5, %v627_v36 }
  0xc7   :  { %404 = vrcp.f32 %v216_v42  ;;  %v213_v44 = vand.u32 2147483647, %v639_v43  ;;  %v229_v50 = vand.u32 2147483648, %v216_v42  ;;  %v227_v52 = vand.u32 2147483647, %v216_v42 }
  0xc8   :  { %vm223_vm2 = vweird.f32 %v216_v42  ;;  %v270_v11 = vmul.f32 1.442695, %v268_v3  ;;  %vm279_vm10 = vcmp.lt.f32.partialorder %v639_v43, 0.0 }
  0xc9   :  { %v215_v45 = vmul.f32 0.3275911, %v213_v44  ;;  %v230_v55 = vor.u32 1.1754944e-38, %v229_v50  ;;  %vm228_vm4 = vcmp.eq.f32.partialorder %v227_v52, 8.507059e+37  ;;  %v267_v8 = vsub.f32 0.0, %v213_v44  ;;  %v290_v52 = vld [vmem:[#allocation2] sm:$0xff] }
  0xcb   :  { %v217_v46 = vadd.f32 1.0, %v215_v45  ;;  %v269_v16 = vmul.f32 %v267_v8, %v213_v44  ;;  %v205_v37 = vpop.f32.mrf.mxu1 }
  0xcd   :  { %v405_v47 = vpop.eup %404  ;;  %406 = vrcp.f32 %v217_v46  ;;  %v244_v62 = vand.u32 2147483648, %v217_v46  ;;  %v242_v1 = vand.u32 2147483647, %v217_v46  ;;  %vm238_vm6 = vweird.f32 %v217_v46 }
  0xce   :  { %v219_v48 = vmul.f32 %v405_v47, %v216_v42  ;;  %vm224_vm1 = vweird.f32 %v405_v47  ;;  %408 = vpow2.f32 %v270_v11  ;;  %v272_v21 = vmul.f32 1.442695, %v269_v16 }
  0xcf   :  { %vm225_vm3 = vmor %vm223_vm2, %vm224_vm1  ;;  %v245_v5 = vor.u32 1.1754944e-38, %v244_v62  ;;  %vm243_vm8 = vcmp.eq.f32.partialorder %v242_v1, 8.507059e+37 }
  0xd0   :  { %v220_v49 = vsub.f32 1.0, %v219_v48  ;;  %410 = vpow2.f32 %v272_v21  ;;  %v209_v48 = vmul.f32 0.5, %v636_v41 }
  0xd2   :  { %v221_v51 = vmul.f32 %v405_v47, %v220_v49 }
  0xd3   :  { %v407_v53 = vpop.eup %406 }
  0xd4   :  { %v222_v54 = vadd.f32 %v405_v47, %v221_v51  ;;  %v234_v56 = vmul.f32 %v407_v53, %v217_v46  ;;  %vm239_vm5 = vweird.f32 %v407_v53  ;;  %v409_v25 = vpop.eup %408 }
  0xd5   :  { %vm240_vm7 = vmor %vm238_vm6, %vm239_vm5 }
  0xd6   :  { %v226_v58 = vsel %vm225_vm3, %v405_v47, %v222_v54  ;;  %v235_v60 = vsub.f32 1.0, %v234_v56  ;;  %v411_v33 = vpop.eup %410  ;;  %v291_v54 = vld [vmem:[#allocation2 + $0x8] sm:$0xff] }
  0xd7   :  { %v231_v61 = vsel %vm228_vm4, %v230_v55, %v226_v58 }
  0xd8   :  { %v248_v63 = vmul.f32 1.0614054, %v231_v61  ;;  %v236_v0 = vmul.f32 %v407_v53, %v235_v60 }
  0xda   :  { %v250_v2 = vadd.f32 -1.4531521, %v248_v63  ;;  %v237_v4 = vadd.f32 %v407_v53, %v236_v0 }
  0xdc   :  { %v252_v6 = vmul.f32 %v250_v2, %v231_v61  ;;  %v241_v7 = vsel %vm240_vm7, %v407_v53, %v237_v4 }
  0xdd   :  { %v246_v10 = vsel %vm243_vm8, %v245_v5, %v241_v7 }
  0xde   :  { %v254_v9 = vadd.f32 1.4214138, %v252_v6  ;;  %v249_v12 = vmul.f32 1.0614054, %v246_v10 }
  0xe0   :  { %v256_v13 = vmul.f32 %v254_v9, %v231_v61  ;;  %v251_v15 = vadd.f32 -1.4531521, %v249_v12 }
  0xe2   :  { %v258_v17 = vadd.f32 -0.28449672, %v256_v13  ;;  %v253_v18 = vmul.f32 %v251_v15, %v246_v10 }
  0xe4   :  { %v260_v19 = vmul.f32 %v258_v17, %v231_v61  ;;  %v255_v20 = vadd.f32 1.4214138, %v253_v18 }
  0xe6   :  { %v262_v22 = vadd.f32 0.2548296, %v260_v19  ;;  %v257_v23 = vmul.f32 %v255_v20, %v246_v10 }
  0xe8   :  { %v264_v24 = vmul.f32 %v262_v22, %v231_v61  ;;  %v259_v26 = vadd.f32 -0.28449672, %v257_v23 }
  0xea   :  { %v274_v27 = vmul.f32 %v409_v25, %v264_v24  ;;  %v261_v28 = vmul.f32 %v259_v26, %v246_v10 }
  0xec   :  { %v276_v29 = vsub.f32 1.0, %v274_v27  ;;  %v263_v30 = vadd.f32 0.2548296, %v261_v28 }
  0xee   :  { %v280_v31 = vsub.f32 0.0, %v276_v29  ;;  %v265_v32 = vmul.f32 %v263_v30, %v246_v10 }
  0xf0   :  { %v282_v35 = vsel %vm278_vm9, %v280_v31, %v276_v29  ;;  %v275_v40 = vmul.f32 %v411_v33, %v265_v32 }
  0xf1   :  { %v284_v39 = vadd.f32 1.0, %v282_v35 }
  0xf2   :  { %v277_v44 = vsub.f32 1.0, %v275_v40 }
  0xf3   :  { %v286_v42 = vmul.f32 %v284_v39, %v208_v38 }
  0xf4   :  { %v281_v46 = vsub.f32 0.0, %v277_v44 }
  0xf5   :  { %v288_v45 = vmul.f32 %v286_v42, %v202_v34 }
  0xf6   :  { %v283_v47 = vsel %vm279_vm10, %v281_v46, %v277_v44 }
  0xf7   :  { %312 = vmatmul.f32.vlgmr.msra.gmra.mxu2 %v288_v45  ;;  %v285_v49 = vadd.f32 1.0, %v283_v47 }
  0xf9   :  { %v287_v50 = vmul.f32 %v285_v49, %v209_v48 }
  0xfb   :  { %v289_v51 = vmul.f32 %v287_v50, %v205_v37 }
  0xff   :  { %315 = vmatmul.f32.gmra.mxu2 %v289_v51 }
 0x17a   :  { %v313_v53 = vpop.f32.mrf.mxu2 }
 0x17b   :  { %v319_v36 = vadd.f32 %v313_v53, %v290_v52 }
 0x17d   :  { %321 = vst.msk [vmem:[#allocation2] sm:$0xff] %vm22_vm0, %v319_v36 }
 0x182   :  { %v316_v55 = vpop.f32.mrf.mxu2 }
 0x183   :  { %v320_v56 = vadd.f32 %v316_v55, %v291_v54 }
 0x184   :  { %v326_v57 = vld [vmem:[#allocation2] sm:$0xff] }
 0x185   :  { %322 = vst.msk [vmem:[#allocation2 + $0x8] sm:$0xff] %vm22_vm0, %v320_v56 }
 0x186   :  { %328 = vst.msk [vmem:[#allocation3] sm:$0xff] %vm22_vm0, %v326_v57 }
 0x18c   :  { %v327_v41 = vld [vmem:[#allocation2 + $0x8] sm:$0xff] }
 0x18d   :  { %329 = vst.msk [vmem:[#allocation3 + $0x8] sm:$0xff] %vm22_vm0, %v327_v41 }
 0x18e   :  { %342 = dma.vmem_to_hbm [thread:$0]  %s335_s10, 256, %s337_s13, [#allocation4], %s440_s14, %s440_s14, %s441_s15  }
 0x18f   :  { %436 = dma.done.wait [#allocation4], 256  }
 0x190   :  { %437 = vsyncadd [#allocation4], 4294967040 }
 0x191   :  { %347 = vsyncpa [#allocation4], 1 }

</bundles_post_ra>
